<compile_context>
chip_gen: v7x
topology: tpu7x:2x2x1
jax: 0.10.0
libtpu: 0.0.40
codegen_flags: <defaults>
</compile_context>

<pallas_src>
import math
import numpy as np
import jax
import jax.numpy as jnp
from jax.experimental import pallas as pl
from jax.experimental.pallas import tpu as pltpu

BOD_TOKEN = 128256
EOD_TOKEN = 128257
STEP_START_TOKEN = 2501
STEP_END_TOKEN = 40171
END_OF_TEXT_TOKEN = 128009

_LANE = 128
_VMEM_LIMIT = 32 * 1024 * 1024   # explicit: v5e's default scoped VMEM is only 16 MiB


def _round_up(x: int, m: int) -> int:
    return (x + m - 1) // m * m


# ----------------------------------------------------------------------------
# Host-side glue: faithful numpy port of parse_input_ids (data-dependent
# control flow over token ids — no clean Pallas equivalent).
# ----------------------------------------------------------------------------
def parse_input_ids_np(ids: np.ndarray) -> np.ndarray:
    ids = np.asarray(ids)
    B, L = ids.shape
    mask = np.zeros_like(ids)
    if not (ids == BOD_TOKEN).any() or not (ids == EOD_TOKEN).any():
        return np.ones_like(ids)
    bod_idx = np.full(B, -1, dtype=np.int64)
    eod_idx = np.full(B, -1, dtype=np.int64)
    for b in range(B):
        bp = np.nonzero(ids[b] == BOD_TOKEN)[0]
        ep = np.nonzero(ids[b] == EOD_TOKEN)[0]
        if bp.size:
            bod_idx[b] = bp[0]
        if ep.size:
            eod_idx[b] = ep[0]
    valid = (bod_idx != -1) & (eod_idx != -1)
    mask[~valid] = 1
    for b in range(B):
        if valid[b]:
            bi, ei = bod_idx[b], eod_idx[b]
            mask[b, :bi] = 1
            mask[b, bi] = 3
            mask[b, ei] = 4
            mask[b, ei + 1:] = 2
    for b in range(B):
        if not valid[b]:
            continue
        starts = np.nonzero(ids[b] == STEP_START_TOKEN)[0]
        ends = np.nonzero(ids[b] == STEP_END_TOKEN)[0]
        starts = starts[(starts > bod_idx[b]) & (starts < eod_idx[b])]
        ends = ends[(ends > bod_idx[b]) & (ends < eod_idx[b])]
        n = min(len(starts), len(ends))
        v = 6
        for s, e in zip(starts[:n], ends[:n]):
            if s < e:
                mask[b, s:e + 1] = v
                v += 1
    mask[ids == END_OF_TEXT_TOKEN] = 5
    return mask


def squaredcos_cap_v2_alphas_cumprod(T: int) -> np.ndarray:
    def alpha_bar(t):
        return math.cos((t + 0.008) / 1.008 * math.pi / 2) ** 2
    betas = np.array(
        [min(1.0 - alpha_bar((i + 1) / T) / alpha_bar(i / T), 0.999) for i in range(T)],
        dtype=np.float64,
    )
    return np.cumprod(1.0 - betas).astype(np.float32)


# ----------------------------------------------------------------------------
# Fused Pallas kernel: per batch b,
#   steps = pool[b] @ table                       (gather+segment-mean, MXU, bf16)
#   x     = sa[b] * steps[1:] + noise_scaled[b]   (q_sample; noise pre-scaled)
#   pred  = steps[:-1] @ W1 + x @ W2 + bias       (adaptor, two K=Dp dots)
#   out[b] = (pred - steps[1:])**2                (per-batch tile; reduced in JAX)
# ----------------------------------------------------------------------------
def _fused_cot_kernel(pool_ref, table_ref, sa_ref, noise_ref,
                      w1_ref, w2_ref, bias_ref, out_ref):
    # Segment means: one MXU matmul over the vocabulary (bf16 operands, f32 acc).
    steps = jnp.dot(pool_ref[0].astype(jnp.bfloat16), table_ref[...],
                    preferred_element_type=jnp.float32)            # [S, Dp] f32
    prev = steps[:-1, :]                                           # [S-1, Dp]
    nxt = steps[1:, :]                                             # [S-1, Dp]
    # q_sample: sqrt(ac[t]) * x_start + sqrt(1-ac[t]) * noise (noise pre-scaled).
    x = sa_ref[0] * nxt + noise_ref[0]
    # Adaptor Linear(2D -> D) as two K=Dp dots (no concat -> no VMEM copy).
    pred = (jnp.dot(prev.astype(jnp.bfloat16), w1_ref[...],
                    preferred_element_type=jnp.float32)
            + jnp.dot(x.astype(jnp.bfloat16), w2_ref[...],
                      preferred_element_type=jnp.float32)
            + bias_ref[...])
    d = pred - nxt
    out_ref[0] = d * d


def cot_sq_err(pool, table_bf16, sa_full, noise_scaled, w1, w2, bias):
    B, S, V = pool.shape
    Dp = table_bf16.shape[1]
    Sm1 = S - 1
    return pl.pallas_call(
        _fused_cot_kernel,
        out_shape=jax.ShapeDtypeStruct((B, Sm1, Dp), jnp.float32),
        grid=(B,),
        in_specs=[
            pl.BlockSpec((1, S, V), lambda b: (b, 0, 0)),       # pooling matrix
            pl.BlockSpec((V, Dp), lambda b: (0, 0)),            # embedding table (bf16)
            pl.BlockSpec((1, Sm1, Dp), lambda b: (b, 0, 0)),    # sqrt(ac[t]) lane-bcast
            pl.BlockSpec((1, Sm1, Dp), lambda b: (b, 0, 0)),    # sqrt(1-ac[t]) * noise
            pl.BlockSpec((Dp, Dp), lambda b: (0, 0)),           # adaptor W1^T (bf16)
            pl.BlockSpec((Dp, Dp), lambda b: (0, 0)),           # adaptor W2^T (bf16)
            pl.BlockSpec((1, Dp), lambda b: (0, 0)),            # adaptor bias
        ],
        out_specs=pl.BlockSpec((1, Sm1, Dp), lambda b: (b, 0, 0)),
        compiler_params=pltpu.CompilerParams(
            dimension_semantics=("parallel",),                  # independent per batch
            vmem_limit_bytes=_VMEM_LIMIT,
        ),
    )(pool, table_bf16, sa_full, noise_scaled, w1, w2, bias)


# ----------------------------------------------------------------------------
# DiffusiveCoT forward (Pallas-backed).
# ----------------------------------------------------------------------------
def diffusive_cot_forward(input_ids, labels, params, key, pad_token_id=0,
                          diffusion_steps=100):
    del labels, pad_token_id   # the reference forward ignores `labels`; pad only
                               # feeds the out-of-scope GPT-2 question/answer path
    table = params["embedding"]          # [V, D]
    W = params["adaptor_w"]              # [D, 2D]  (nn.Linear weight)
    bvec = params["adaptor_b"]           # [D]
    V, D = table.shape
    Dp = _round_up(D, _LANE)

    input_ids_np = np.asarray(input_ids)
    B, L = input_ids_np.shape

    # ---- token parsing (host, data-dependent) ----
    mask = parse_input_ids_np(input_ids_np)

    # ---- step-class lists per batch: [BOD, step6, step7, ..., EOD] ----
    per_batch_classes = []
    for bi in range(B):
        step_keys = sorted(int(v) for v in np.unique(mask[bi]) if v >= 6)
        per_batch_classes.append([3] + step_keys + [4])
    S = max(len(c) for c in per_batch_classes)
    Sm1 = S - 1

    # ---- pooling-over-vocab matrix (fuses embedding gather + segment mean):
    #      steps[b] = pool[b] @ table.   Padded step rows stay all-zero, matching
    #      the reference's pad_sequence(padding_value=0.0).
    pool = np.zeros((B, S, V), dtype=np.float32)
    for bi in range(B):
        for r, c in enumerate(per_batch_classes[bi]):
            pos = np.nonzero(mask[bi] == c)[0]
            if pos.size:
                wgt = 1.0 / float(pos.size)
                for p in pos:
                    pool[bi, r, int(input_ids_np[bi, p]) % V] += wgt
    # NOTE: ids mapped into the table with % V (toy vocab); a real model's vocab
    # contains the special tokens, so no aliasing would occur there.

    # ---- lane-pad table / adaptor weights; pre-cast MXU operands to bf16 ----
    table_p = (jnp.zeros((V, Dp), jnp.float32).at[:, :D].set(table)
               .astype(jnp.bfloat16))
    w_t = W.T                                              # [2D, D]
    w1_p = (jnp.zeros((Dp, Dp), jnp.float32).at[:D, :D].set(w_t[:D])
            .astype(jnp.bfloat16))                         # multiplies `prev`
    w2_p = (jnp.zeros((Dp, Dp), jnp.float32).at[:D, :D].set(w_t[D:])
            .astype(jnp.bfloat16))                         # multiplies noised `x`
    b_p = jnp.zeros((1, Dp), jnp.float32).at[0, :D].set(bvec)

    # ---- diffusion schedule scales + noise (noise pre-scaled by sqrt(1-ac)) ----
    ac = jnp.asarray(squaredcos_cap_v2_alphas_cumprod(diffusion_steps))
    k_t, k_n = jax.random.split(key)
    t_all = jax.random.randint(k_t, (B, Sm1), 0, diffusion_steps)
    sa = jnp.sqrt(ac[t_all])[..., None]                    # [B, Sm1, 1]
    sb = jnp.sqrt(1.0 - ac[t_all])[..., None]
    noise = jax.random.normal(k_n, (B, Sm1, D), dtype=jnp.float32)
    noise_p = jnp.zeros((B, Sm1, Dp), jnp.float32).at[..., :D].set(sb * noise)
    sa_full = jnp.broadcast_to(sa, (B, Sm1, Dp)).astype(jnp.float32)

    # ---- single fused launch; per-batch squared-error tiles, reduce in JAX ----
    sq_err = cot_sq_err(jnp.asarray(pool), table_p, sa_full, noise_p,
                        w1_p, w2_p, b_p)
    cot_loss = jnp.sum(sq_err) / jnp.float32(B * Sm1 * D)   # nn.MSELoss 'mean'

    # TODO(synk): diffusion.p_sample_loop (GPT-2 denoiser) would refine the adaptor
    # output into pred_xstart, and the answer CE loop needs GPT-2 logits + kv_cache;
    # the adaptor projection stands in for pred_xstart and answer_loss is omitted.
    answer_loss = jnp.float32(0.0)
    return cot_loss + answer_loss


# ----------------------------------------------------------------------------
# Main: deterministic params + inputs, run once.
# ----------------------------------------------------------------------------
if __name__ == "__main__":
    V, D = 512, 32      # small hidden_size consistent with Linear(2*hidden, hidden)
    key = jax.random.PRNGKey(0)
    k_tab, k_w, k_b, k_fwd = jax.random.split(key, 4)
    params = {
        "embedding": 0.02 * jax.random.normal(k_tab, (V, D), dtype=jnp.float32),
        "adaptor_w": 0.02 * jax.random.normal(k_w, (D, 2 * D), dtype=jnp.float32),
        "adaptor_b": 0.02 * jax.random.normal(k_b, (D,), dtype=jnp.float32),
    }

    # Two sequences of length 24: question | BOD | steps | EOD | answer | EOT.
    ids0 = [5, 6, 7, 8, 9,
            BOD_TOKEN,
            STEP_START_TOKEN, 10, 11, STEP_END_TOKEN,
            STEP_START_TOKEN, 12, STEP_END_TOKEN,
            EOD_TOKEN,
            20, 21, 22, 23, 24, 25,
            END_OF_TEXT_TOKEN,
            26, 27, 28]
    ids1 = [30, 31, 32,
            BOD_TOKEN,
            STEP_START_TOKEN, 33, 34, 35, STEP_END_TOKEN,
            STEP_START_TOKEN, 36, STEP_END_TOKEN,
            STEP_START_TOKEN, 37, STEP_END_TOKEN,
            EOD_TOKEN,
            40, 41, 42, 43, 44, 45, 46,
            END_OF_TEXT_TOKEN]
    input_ids = np.array([ids0, ids1], dtype=np.int64)   # [2, 24]
    labels = input_ids.copy()                            # ignored by forward

    loss = diffusive_cot_forward(input_ids, labels, params, k_fwd, pad_token_id=0)
    jax.block_until_ready(loss)
    assert np.isfinite(np.asarray(loss))
    print("KERNEL_OK")
</pallas_src>

<mosaic_0001>
module attributes {stable_mosaic.version = 11 : i64} {
  func.func @_fused_cot_kernel(%arg0: i32, %arg1: memref<1x5x512xf32, #tpu.memory_space<vmem>>, %arg2: memref<512x128xbf16, #tpu.memory_space<vmem>>, %arg3: memref<1x4x128xf32, #tpu.memory_space<vmem>>, %arg4: memref<1x4x128xf32, #tpu.memory_space<vmem>>, %arg5: memref<128x128xbf16, #tpu.memory_space<vmem>>, %arg6: memref<128x128xbf16, #tpu.memory_space<vmem>>, %arg7: memref<1x128xf32, #tpu.memory_space<vmem>>, %arg8: memref<1x4x128xf32, #tpu.memory_space<vmem>>) attributes {dimension_semantics = [#tpu.dimension_semantics<parallel>], iteration_bounds = array<i64: 2>, scalar_prefetch = 0 : i64, scratch_operands = 0 : i64, tpu.core_type = #tpu.core_type<tc>, window_params = [{transform_indices = @transform_0, window_bounds = array<i64: 1, 5, 512>}, {pipeline_mode = #tpu.pipeline_mode<synchronous>, transform_indices = @transform_1, window_bounds = array<i64: 512, 128>}, {transform_indices = @transform_2, window_bounds = array<i64: 1, 4, 128>}, {transform_indices = @transform_3, window_bounds = array<i64: 1, 4, 128>}, {pipeline_mode = #tpu.pipeline_mode<synchronous>, transform_indices = @transform_4, window_bounds = array<i64: 128, 128>}, {pipeline_mode = #tpu.pipeline_mode<synchronous>, transform_indices = @transform_5, window_bounds = array<i64: 128, 128>}, {pipeline_mode = #tpu.pipeline_mode<synchronous>, transform_indices = @transform_6, window_bounds = array<i64: 1, 128>}, {transform_indices = @transform_7, window_bounds = array<i64: 1, 4, 128>}]} {
    %c0 = arith.constant 0 : index
    %c0_0 = arith.constant 0 : index
    %c0_1 = arith.constant 0 : index
    %0 = vector.load %arg1[%c0, %c0_0, %c0_1] : memref<1x5x512xf32, #tpu.memory_space<vmem>>, vector<1x5x512xf32>
    %1 = vector.shape_cast %0 : vector<1x5x512xf32> to vector<5x512xf32>
    %2 = arith.truncf %1 : vector<5x512xf32> to vector<5x512xbf16>
    %c0_2 = arith.constant 0 : index
    %c0_3 = arith.constant 0 : index
    %3 = vector.load %arg2[%c0_2, %c0_3] : memref<512x128xbf16, #tpu.memory_space<vmem>>, vector<512x128xbf16>
    %cst = arith.constant dense<0.000000e+00> : vector<5x128xf32>
    %4 = tpu.matmul %2, %3, %cst {dimension_numbers = #tpu.dot_dimension_numbers<[1], [0], [0], [1], [0, 0, 1, 1], [], []>} : vector<5x512xbf16>, vector<512x128xbf16>, vector<5x128xf32> -> vector<5x128xf32>
    %5 = vector.extract_strided_slice %4 {offsets = [0, 0], sizes = [4, 128], strides = [1, 1]} : vector<5x128xf32> to vector<4x128xf32>
    %6 = vector.extract_strided_slice %4 {offsets = [1, 0], sizes = [4, 128], strides = [1, 1]} : vector<5x128xf32> to vector<4x128xf32>
    %c0_4 = arith.constant 0 : index
    %c0_5 = arith.constant 0 : index
    %c0_6 = arith.constant 0 : index
    %7 = vector.load %arg3[%c0_4, %c0_5, %c0_6] : memref<1x4x128xf32, #tpu.memory_space<vmem>>, vector<1x4x128xf32>
    %8 = vector.shape_cast %7 : vector<1x4x128xf32> to vector<4x128xf32>
    %9 = arith.mulf %8, %6 : vector<4x128xf32>
    %c0_7 = arith.constant 0 : index
    %c0_8 = arith.constant 0 : index
    %c0_9 = arith.constant 0 : index
    %10 = vector.load %arg4[%c0_7, %c0_8, %c0_9] : memref<1x4x128xf32, #tpu.memory_space<vmem>>, vector<1x4x128xf32>
    %11 = vector.shape_cast %10 : vector<1x4x128xf32> to vector<4x128xf32>
    %12 = arith.addf %9, %11 : vector<4x128xf32>
    %13 = arith.truncf %5 : vector<4x128xf32> to vector<4x128xbf16>
    %c0_10 = arith.constant 0 : index
    %c0_11 = arith.constant 0 : index
    %14 = vector.load %arg5[%c0_10, %c0_11] : memref<128x128xbf16, #tpu.memory_space<vmem>>, vector<128x128xbf16>
    %cst_12 = arith.constant dense<0.000000e+00> : vector<4x128xf32>
    %15 = tpu.matmul %13, %14, %cst_12 {dimension_numbers = #tpu.dot_dimension_numbers<[1], [0], [0], [1], [0, 0, 1, 1], [], []>} : vector<4x128xbf16>, vector<128x128xbf16>, vector<4x128xf32> -> vector<4x128xf32>
    %16 = arith.truncf %12 : vector<4x128xf32> to vector<4x128xbf16>
    %c0_13 = arith.constant 0 : index
    %c0_14 = arith.constant 0 : index
    %17 = vector.load %arg6[%c0_13, %c0_14] : memref<128x128xbf16, #tpu.memory_space<vmem>>, vector<128x128xbf16>
    %cst_15 = arith.constant dense<0.000000e+00> : vector<4x128xf32>
    %18 = tpu.matmul %16, %17, %cst_15 {dimension_numbers = #tpu.dot_dimension_numbers<[1], [0], [0], [1], [0, 0, 1, 1], [], []>} : vector<4x128xbf16>, vector<128x128xbf16>, vector<4x128xf32> -> vector<4x128xf32>
    %19 = arith.addf %15, %18 : vector<4x128xf32>
    %c0_16 = arith.constant 0 : index
    %c0_17 = arith.constant 0 : index
    %20 = vector.load %arg7[%c0_16, %c0_17] : memref<1x128xf32, #tpu.memory_space<vmem>>, vector<1x128xf32>
    %21 = vector.broadcast %20 : vector<1x128xf32> to vector<4x128xf32>
    %22 = arith.addf %19, %21 : vector<4x128xf32>
    %23 = arith.subf %22, %6 : vector<4x128xf32>
    %24 = arith.mulf %23, %23 : vector<4x128xf32>
    %c0_18 = arith.constant 0 : index
    %c0_19 = arith.constant 0 : index
    %c0_20 = arith.constant 0 : index
    %25 = vector.load %arg8[%c0_18, %c0_19, %c0_20] : memref<1x4x128xf32, #tpu.memory_space<vmem>>, vector<1x4x128xf32>
    %26 = vector.shape_cast %25 : vector<1x4x128xf32> to vector<4x128xf32>
    %27 = vector.shape_cast %24 : vector<4x128xf32> to vector<1x4x128xf32>
    tpu.vector_store %arg8[%c0_18, %c0_19, %c0_20], %27 {strides = array<i32>} : memref<1x4x128xf32, #tpu.memory_space<vmem>>, vector<1x4x128xf32>,
    return
  }
  func.func @transform_0(%arg0: i32) -> (i32, i32, i32) {
    %c0_i32 = arith.constant 0 : i32
    %c0_i32_0 = arith.constant 0 : i32
    %c0_i32_1 = arith.constant 0 : i32
    return %arg0, %c0_i32, %c0_i32_0 : i32, i32, i32
  }
  func.func @transform_1(%arg0: i32) -> (i32, i32) {
    %c0_i32 = arith.constant 0 : i32
    %c0_i32_0 = arith.constant 0 : i32
    %c0_i32_1 = arith.constant 0 : i32
    return %c0_i32, %c0_i32_0 : i32, i32
  }
  func.func @transform_2(%arg0: i32) -> (i32, i32, i32) {
    %c0_i32 = arith.constant 0 : i32
    %c0_i32_0 = arith.constant 0 : i32
    %c0_i32_1 = arith.constant 0 : i32
    return %arg0, %c0_i32, %c0_i32_0 : i32, i32, i32
  }
  func.func @transform_3(%arg0: i32) -> (i32, i32, i32) {
    %c0_i32 = arith.constant 0 : i32
    %c0_i32_0 = arith.constant 0 : i32
    %c0_i32_1 = arith.constant 0 : i32
    return %arg0, %c0_i32, %c0_i32_0 : i32, i32, i32
  }
  func.func @transform_4(%arg0: i32) -> (i32, i32) {
    %c0_i32 = arith.constant 0 : i32
    %c0_i32_0 = arith.constant 0 : i32
    %c0_i32_1 = arith.constant 0 : i32
    return %c0_i32, %c0_i32_0 : i32, i32
  }
  func.func @transform_5(%arg0: i32) -> (i32, i32) {
    %c0_i32 = arith.constant 0 : i32
    %c0_i32_0 = arith.constant 0 : i32
    %c0_i32_1 = arith.constant 0 : i32
    return %c0_i32, %c0_i32_0 : i32, i32
  }
  func.func @transform_6(%arg0: i32) -> (i32, i32) {
    %c0_i32 = arith.constant 0 : i32
    %c0_i32_0 = arith.constant 0 : i32
    %c0_i32_1 = arith.constant 0 : i32
    return %c0_i32, %c0_i32_0 : i32, i32
  }
  func.func @transform_7(%arg0: i32) -> (i32, i32, i32) {
    %c0_i32 = arith.constant 0 : i32
    %c0_i32_0 = arith.constant 0 : i32
    %c0_i32_1 = arith.constant 0 : i32
    return %arg0, %c0_i32, %c0_i32_0 : i32, i32, i32
  }
}

</mosaic_0001>

<bundles_post_ra>
// kernel: tpu_custom_call.1
= control target key start
LH: loop header
LB: loop body
LE: loop exit
PB: predicated region body
PF: predicated region fallthrough
CT: control target
= control target key end

     0   :  { %12 = vsyncpa [#allocation3], 0  ;;  %s1698_s0 = inlined_call_operand.vmem [shape: f32[2,5,512], index: 0, kind: input, shape index: {}]   ;;  %s1699_s1 = inlined_call_operand.hbm [shape: bf16[512,128], index: 1, kind: input, shape index: {}]   ;;  %s1700_s2 = inlined_call_operand.vmem [shape: f32[2,4,128], index: 2, kind: input, shape index: {}]   ;;  %s1701_s3 = inlined_call_operand.vmem [shape: f32[2,4,128], index: 3, kind: input, shape index: {}]   ;;  %s1702_s4 = inlined_call_operand.vmem [shape: bf16[128,128], index: 4, kind: input, shape index: {}]   ;;  %s1703_s5 = inlined_call_operand.hbm [shape: bf16[128,128], index: 5, kind: input, shape index: {}]   ;;  %s1704_s6 = inlined_call_operand.vmem [shape: f32[1,128], index: 6, kind: input, shape index: {}]   ;;  %s1705_s7 = inlined_call_operand.hbm [shape: f32[2,4,128], index: 7, kind: output, shape index: {}]  }
   0x1   :  { %13 = vsyncpa [#allocation6], 0 }
   0x2   :  { %14 = vsyncpa [#allocation4], 0 }
   0x3   :  { %16 = vsyncpa [#allocation4 + $0x1], 0  ;;  %s1489_s24 = smov 0   ;;  %s1491_s25 = smov 0  }
   0x4   :  { %s1493_s26 = smov 0   ;;  %s1495_s27 = smov 0  }
   0x5 LB: > { %s1510_s28 = sadd.s32 4294967295, %s1440_s27   ;;  %s1033_s29 = sadd.s32 4294967294, %s1440_s27   ;;  %s1440_s27 = sphi %s1495_s27, %s1725_s27   ;;  %s1436_s26 = sphi %s1493_s26, %s1724_s26   ;;  %s1432_s25 = sphi %s1491_s25, %s1723_s25   ;;  %s1428_s24 = sphi %s1489_s24, %s1722_s24  }
   0x6   : > { %s1514_s30 = sadd.s32 1, %s1440_s27   ;;  %s191_s8 = sadd.s32 1, %s1436_s26 }
   0x7   : > { %s188_s9 = ssub.s32 %s1440_s27, %s1514_s30  ;;  %p201_p0 = scmp.ne.s32.totalorder %s1436_s26, %s1432_s25 }
   0x8   : > { %p189_p1 = scmp.eq.s32.totalorder %s188_s9, 0  ;;  %p202_p2 = scmp.eq.s32.totalorder %s1510_s28, 1 }
   0x9   : > { %p207_p3 = scmp.ne.s32.totalorder %s1432_s25, %s1428_s24  ;;  %p208_p4 = scmp.eq.s32.totalorder %s1033_s29, 1 }
   0xa   : > { %s1525_s10 = scalar_select %p189_p1, %s1436_s26, %s191_s8  }
   0xb   : > { %p1527_p5 = por %p202_p2, %p201_p0  ;;  %p1531_p6 = por %p208_p4, %p207_p3 }
   0xc   : > { %1709 = sst [smem:[#allocation11_spill]] %s1525_s10  ;;  %p1034_p7 = scmp.ge.s32.totalorder %s1440_s27, 1 }
   0xd   : > { %s1710_s11 = scalar_select %p1527_p5, 1, 0 }
   0xe   : > { %s1711_s12 = scalar_select %p1531_p6, 1, 0 }
   0xf   : > { %p215_p8 = scmp.lt.s32.totalorder %s1440_s27, 3  ;;  %p1706_p9 = scmp.eq.s32.totalorder %s1510_s28, 0 }
  0x10   : > { %s1442_s14 = smov [#allocation2]   ;;  %s1443_s17 = smov [#allocation5]  }
  0x11   : > { %p1538_p10 = pnand %p1034_p7, %p215_p8  ;;  %s227_s15 = sshll.u32 %s1442_s14, 4  ;;  %s228_s15 = int_to_ptr.vmem [resolvable:$true] %s227_s15 }
  0x12   : > { %s243_s18 = sshll.u32 %s1443_s17, 4  ;;  %s1314_s21 = scalar_lea.hbm %s1699_s1, 4096  ;;  %s1550_s18 = int_to_ptr.vmem [resolvable:$true] %s243_s18 }
  0x13   : > { %s1712_s13 = scalar_select %p1538_p10, 1, 0 }
  0x14   : > { %p1212_p11 = pneg %p1538_p10  ;;  %p1315_p13 = scmp.ne.s32.totalorder %s1699_s1, %s1314_s21 }
  0x15   : > { %p1321_p3 = scmp.lt.u32.totalorder %s1314_s21, %s1699_s1 }
  0x16   : > { %p1546_p12 = pnand %p1706_p9, %p1212_p11 }
  0x18   : > { %p1316_p0 = pneg %p1546_p12 }
  0x1a   : > { %p1317_p1 = pnand %p1316_p0, %p1315_p13 }
  0x1c   : > { %p1318_p2 = pneg %p1317_p1 }
  0x1e   : > { %p1323_p4 = pnand %p1321_p3, %p1318_p2 }
  0x20   : > { %1326 = shalt.err (!%p1323_p4)
}
  0x21   : > { %s1327_s9 = scalar_lea.vmem %s228_s15, 4096  ;;  %p1335_p9 = scmp.lt.s32.totalorder %s228_s15, %s228_s15 }
  0x22   : > { %p1328_p7 = scmp.ne.s32.totalorder %s228_s15, %s1327_s9  ;;  %p1336_p6 = scmp.lt.s32.totalorder %s1327_s9, %s1327_s9 }
  0x24   : > { %p1330_p8 = pnand %p1328_p7, %p1316_p0  ;;  %p1337_p5 = por %p1336_p6, %p1335_p9 }
  0x26   : > { %p1331_p11 = pneg %p1330_p8 }
  0x28   : > { %p1338_p10 = pnand %p1337_p5, %p1331_p11 }
  0x2a   : > { %1341 = shalt.err (!%p1338_p10)
}
  0x2b   : > { %s1444_s14 = smov 64   ;;  %s1445_s17 = smov 4  }
  0x2c   : > { %1215 = dma.hbm_to_vmem [thread:$0]  (!%p1546_p12), %s1699_s1, 4096, %s228_s15, [#allocation3], %s1444_s14, %s1444_s14, %s1445_s17  }
  0x2d   : > { %s1342_s23 = scalar_lea.hbm %s1703_s5, 1024 }
  0x2e   : > { %p1343_p13 = scmp.ne.s32.totalorder %s1703_s5, %s1342_s23  ;;  %p1349_p9 = scmp.lt.u32.totalorder %s1342_s23, %s1703_s5 }
  0x30   : > { %p1345_p5 = pnand %p1343_p13, %p1316_p0 }
  0x32   : > { %p1346_p6 = pneg %p1345_p5 }
  0x34   : > { %p1351_p10 = pnand %p1349_p9, %p1346_p6 }
  0x36   : > { %1354 = shalt.err (!%p1351_p10)
}
  0x37   : > { %s1355_s15 = scalar_lea.vmem %s1550_s18, 1024  ;;  %p1363_p4 = scmp.lt.s32.totalorder %s1550_s18, %s1550_s18 }
  0x38   : > { %p1356_p1 = scmp.ne.s32.totalorder %s1550_s18, %s1355_s15  ;;  %p1364_p7 = scmp.lt.s32.totalorder %s1355_s15, %s1355_s15 }
  0x3a   : > { %p1358_p2 = pnand %p1356_p1, %p1316_p0  ;;  %p1365_p8 = por %p1364_p7, %p1363_p4 }
  0x3c   : > { %p1359_p3 = pneg %p1358_p2 }
  0x3e   : > { %p1366_p11 = pnand %p1365_p8, %p1359_p3 }
  0x40   : > { %1369 = shalt.err (!%p1366_p11)
}
  0x41   : > { %1218 = dma.hbm_to_vmem [thread:$0]  (!%p1546_p12), %s1703_s5, 1024, %s1550_s18, [#allocation6], %s1444_s14, %s1444_s14, %s1445_s17  }
  0x42   : > { %p1714_p13 = scmp.ne.s32.totalorder %s1712_s13, 0 }
  0x43   : > { %p1715_p5 = scmp.eq.s32.totalorder (!%p1714_p13), %s1510_s28, 0 }
  0x44   : > { %284 = sbr.rel (%p1714_p13) target bundleno = 574 (0x23e), region = 48 }
  0x4b   : > { %1415 = dma.done.wait (%p1715_p5), [#allocation3], 4096   ;;  %p1716_p0 = pmov %p1715_p5 }
  0x4d   : > { %1417 = vsyncadd (%p1716_p0), [#allocation3], 4294963200  ;;  %p1717_p6 = pmov %p1716_p0 }
  0x4e   : > { %p1718_p9 = pmov %p1716_p0 }
  0x4f   : > { %1419 = dma.done.wait (%p1717_p6), [#allocation6], 1024  }
  0x50   : > { %1421 = vsyncadd (%p1718_p9), [#allocation6], 4294966272  ;;  %v1266_v0 = vld [vmem:[#allocation2 + $0x40] sm:$0xff]   ;;  %v1270_v4 = vld [vmem:[#allocation2 + $0x48] sm:$0xff]   ;;  %p328_p12 = scmp.lt.s32.totalorder %s1510_s28, 1  ;;  %v1446_v39 = vmov 0.0  }
  0x51   : > { %v1267_v1 = vld [vmem:[#allocation2 + $0xc0] sm:$0xff]   ;;  %1100 = vmatprep.subr.bf16.mxu0 %v1266_v0  ;;  %v1271_v5 = vld [vmem:[#allocation2 + $0xc8] sm:$0xff]   ;;  %v1274_v8 = vld [vmem:[#allocation2 + $0x50] sm:$0xff]   ;;  %vm1447_vm0 = vmmov 0   ;;  %s1096_s14 = sshll.u32 %s1510_s28, 6  ;;  %p1719_p1 = scmp.ne.s32.totalorder %s1710_s11, 0 }
  0x52   : > { %v1268_v2 = vld [vmem:[#allocation2] sm:$0xff]   ;;  %1122 = vmatprep.subr.bf16.mxu1 %v1267_v1  ;;  %v1272_v6 = vld [vmem:[#allocation2 + $0x8] sm:$0xff]   ;;  %v1275_v9 = vld [vmem:[#allocation2 + $0xd0] sm:$0xff]   ;;  %s1611_s13 = scalar_select %p328_p12, %s1510_s28, 1 }
  0x53   : > { %v1269_v3 = vld [vmem:[#allocation2 + $0x80] sm:$0xff]   ;;  %1101 = vmatpush3.bf16.msra.mxu0 %v1268_v2  ;;  %v1273_v7 = vld [vmem:[#allocation2 + $0x88] sm:$0xff]   ;;  %v1276_v10 = vld [vmem:[#allocation2 + $0x10] sm:$0xff]   ;;  %s1656_s23 = scalar_lea.hbm %s1705_s7, %s1096_s14  ;;  %s1448_s28 = smov [#allocation7]  }
  0x54   : > { %1123 = vmatpush3.bf16.msra.mxu1 %v1269_v3  ;;  %1102 = vmatprep.subr.bf16.mxu0 %v1270_v4  ;;  %v1277_v11 = vld [vmem:[#allocation2 + $0x90] sm:$0xff]   ;;  %v1278_v12 = vld [vmem:[#allocation2 + $0x58] sm:$0xff]   ;;  %v1282_v16 = vld [vmem:[#allocation2 + $0x60] sm:$0xff]   ;;  %s1099_s16 = sshll.u32 %s1611_s13, 5  ;;  %s1044_s22 = sshll.u32 %s1611_s13, 2 }
  0x55   : > { %1124 = vmatprep.subr.bf16.mxu1 %v1271_v5  ;;  %v1279_v13 = vld [vmem:[#allocation2 + $0xd8] sm:$0xff]   ;;  %v1283_v17 = vld [vmem:[#allocation2 + $0xe0] sm:$0xff]   ;;  %v1286_v20 = vld [vmem:[#allocation2 + $0x68] sm:$0xff]   ;;  %s332_s17 = scalar_lea.vmem %s1698_s0, %s1099_s16  ;;  %s336_s8 = scalar_lea.vmem %s1700_s2, %s1044_s22 }
  0x56   : > { %v1280_v14 = vld [vmem:[#allocation2 + $0x18] sm:$0xff]   ;;  %v1284_v18 = vld [vmem:[#allocation2 + $0x20] sm:$0xff]   ;;  %v1287_v21 = vld [vmem:[#allocation2 + $0xe8] sm:$0xff]   ;;  %s340_s10 = scalar_lea.vmem %s1701_s3, %s1044_s22  ;;  %s325_s13 = sand.u32 1, %s1432_s25  }
  0x57   : > { %1103 = vmatpush3.bf16.msra.mxu0 %v1272_v6  ;;  %v1281_v15 = vld [vmem:[#allocation2 + $0x98] sm:$0xff]   ;;  %v1285_v19 = vld [vmem:[#allocation2 + $0xa0] sm:$0xff]   ;;  %v1288_v22 = vld [vmem:[#allocation2 + $0x28] sm:$0xff]   ;;  %s1041_s19 = sshll.u32 %s325_s13, 2  ;;  %s915_s29 = scalar_lea.sflag [#allocation4], %s325_s13 }
  0x58   : > { %1125 = vmatpush3.bf16.msra.mxu1 %v1273_v7  ;;  %1104 = vmatprep.subr.bf16.mxu0 %v1274_v8  ;;  %v1289_v23 = vld [vmem:[#allocation2 + $0xa8] sm:$0xff]   ;;  %v1290_v24 = vld [vmem:[#allocation2 + $0x70] sm:$0xff]   ;;  %v1294_v28 = vld [vmem:[#allocation2 + $0x78] sm:$0xff]   ;;  %s1374_s9 = sshll.u32 %s1448_s28, 4  ;;  %s1375_s9 = int_to_ptr.vmem [resolvable:$false] %s1374_s9 }
  0x59   : > { %1126 = vmatprep.subr.bf16.mxu1 %v1275_v9  ;;  %v1291_v25 = vld [vmem:[#allocation2 + $0xf0] sm:$0xff]   ;;  %v1295_v29 = vld [vmem:[#allocation2 + $0xf8] sm:$0xff]   ;;  %v343_v32 = vld [vmem:[%s332_s17 + $0x8] sm:$0x1f]  ;;  %s1376_s15 = scalar_lea.vmem %s1375_s9, 128 }
  0x5a   : > { %v1292_v26 = vld [vmem:[#allocation2 + $0x30] sm:$0xff]   ;;  %v1296_v30 = vld [vmem:[#allocation2 + $0x38] sm:$0xff]   ;;  %v342_v34 = vld [vmem:[%s332_s17] sm:$0x1f]  ;;  %v347_v35 = vpack.c.bf16 %v343_v32, %v343_v32 }
  0x5b   : > { %1105 = vmatpush3.bf16.msra.mxu0 %v1276_v10  ;;  %v1293_v27 = vld [vmem:[#allocation2 + $0xb0] sm:$0xff]   ;;  %v1297_v31 = vld [vmem:[#allocation2 + $0xb8] sm:$0xff]   ;;  %v346_v37 = vpack.c.bf16 %v342_v34, %v342_v34  ;;  %v1298_v41 = vld [vmem:[%s1702_s4] sm:$0xff]  }
  0x5c   : > { %1127 = vmatpush3.bf16.msra.mxu1 %v1277_v11  ;;  %1106 = vmatprep.subr.bf16.mxu0 %v1278_v12  ;;  %v345_v33 = vld [vmem:[%s332_s17 + $0x18] sm:$0x1f]  ;;  %v344_v38 = vld [vmem:[%s332_s17 + $0x10] sm:$0x1f]  ;;  %v1300_v42 = vld [vmem:[#allocation5] sm:$0xff]   ;;  %s327_s17 = scalar_lea.vmem [#allocation7], %s1041_s19 }
  0x5d   : > { %1128 = vmatprep.subr.bf16.mxu1 %v1279_v13  ;;  %v349_v36 = vpack.c.bf16 %v345_v33, %v345_v33  ;;  %v348_v40 = vpack.c.bf16 %v344_v38, %v344_v38  ;;  %638 = vmatprep.mubr.bf16.mxu0 %v347_v35  ;;  %v1299_v43 = vld [vmem:[%s1702_s4 + $0x8] sm:$0xff]   ;;  %v1301_v45 = vld [vmem:[%s1702_s4 + $0x10] sm:$0xff]   ;;  %v1303_v47 = vld [vmem:[%s1702_s4 + $0x18] sm:$0xff]   ;;  %s928_s20 = sshll.u32 %s327_s17, 4  ;;  %s1658_s20 = int_to_ptr.vmem [resolvable:$true] %s928_s20 }
  0x5e   : > { %v1302_v44 = vld [vmem:[#allocation5 + $0x8] sm:$0xff]   ;;  %v1304_v46 = vld [vmem:[#allocation5 + $0x10] sm:$0xff]   ;;  %v1306_v48 = vld [vmem:[#allocation5 + $0x18] sm:$0xff]   ;;  %p1377_p4 = scmp.lt.s32.totalorder %s1658_s20, %s1375_s9 }
  0x5f   : > { %1107 = vmatpush3.bf16.msra.mxu0 %v1280_v14  ;;  %678 = vmatprep.mubr.bf16.mxu1 %v349_v36  ;;  %v1305_v49 = vld [vmem:[%s1702_s4 + $0x20] sm:$0xff]   ;;  %v1307_v51 = vld [vmem:[%s1702_s4 + $0x28] sm:$0xff]   ;;  %v1309_v52 = vld [vmem:[%s1702_s4 + $0x30] sm:$0xff]  }
  0x60   : > { %1129 = vmatpush3.bf16.msra.mxu1 %v1281_v15  ;;  %1108 = vmatprep.subr.bf16.mxu0 %v1282_v16  ;;  %v1308_v50 = vld [vmem:[#allocation5 + $0x20] sm:$0xff]   ;;  %v1310_v53 = vld [vmem:[#allocation5 + $0x28] sm:$0xff]   ;;  %v1311_v54 = vld [vmem:[%s1702_s4 + $0x38] sm:$0xff]  }
  0x61   : > { %1130 = vmatprep.subr.bf16.mxu1 %v1283_v17  ;;  %v1312_v55 = vld [vmem:[#allocation5 + $0x30] sm:$0xff]   ;;  %v1313_v56 = vld [vmem:[#allocation5 + $0x38] sm:$0xff]   ;;  %v686_v4 = vld [vmem:[%s336_s8] sm:$0xf]  ;;  %s1370_s8 = scalar_lea.vmem %s1658_s20, 64 }
  0x62   : > { %v691_v7 = vld [vmem:[%s340_s10] sm:$0xf]  ;;  %p1371_p10 = scmp.ne.s32.totalorder %s1658_s20, %s1370_s8  ;;  %p1378_p7 = scmp.lt.s32.totalorder %s1376_s15, %s1370_s8 }
  0x63   : > { %1109 = vmatpush3.bf16.msra.mxu0 %v1284_v18  ;;  %v1094_v16 = vld [vmem:[%s1704_s6] ss:$0 sm:$0xff] }
  0x64   : > { %1131 = vmatpush3.bf16.msra.mxu1 %v1285_v19  ;;  %1110 = vmatprep.subr.bf16.mxu0 %v1286_v20  ;;  %p1372_p2 = pnand %p1371_p10, %p1719_p1  ;;  %p1379_p8 = por %p1378_p7, %p1377_p4 }
  0x65   : > { %1132 = vmatprep.subr.bf16.mxu1 %v1287_v21 }
  0x66   : > { %p1373_p3 = pneg %p1372_p2 }
  0x67   : > { %1111 = vmatpush3.bf16.msra.mxu0 %v1288_v22 }
  0x68   : > { %1133 = vmatpush3.bf16.msra.mxu1 %v1289_v23  ;;  %1112 = vmatprep.subr.bf16.mxu0 %v1290_v24  ;;  %p1380_p11 = pnand %p1379_p8, %p1373_p3 }
  0x69   : > { %1134 = vmatprep.subr.bf16.mxu1 %v1291_v25 }
  0x6b   : > { %1113 = vmatpush3.bf16.msra.mxu0 %v1292_v26 }
  0x6c   : > { %1135 = vmatpush3.bf16.msra.mxu1 %v1293_v27  ;;  %1114 = vmatprep.subr.bf16.mxu0 %v1294_v28 }
  0x6d   : > { %1136 = vmatprep.subr.bf16.mxu1 %v1295_v29 }
  0x6f   : > { %1115 = vmatpush3.bf16.msra.mxu0 %v1296_v30 }
  0x70   : > { %1137 = vmatpush3.bf16.msra.mxu1 %v1297_v31  ;;  %1162 = vmatprep.subr.bf16.mxu0 %v1446_v39 }
  0x71   : > { %1182 = vmatprep.subr.bf16.mxu1 %v1446_v39 }
  0x72   : > { %639 = vmatmul.mubr.bf16.vlgmr.msra.gmra.mrb[0].mxu0 %v346_v37 }
  0x73   : > { %679 = vmatmul.mubr.bf16.vlgmr.msra.gmra.mrb[0].mxu1 %v348_v40  ;;  %1163 = vmatpush3.bf16.msra.mxu0 %v1300_v42 }
  0x74   : > { %1183 = vmatpush3.bf16.msra.mxu1 %v1298_v41  ;;  %1164 = vmatprep.subr.bf16.mxu0 %v1446_v39 }
  0x75   : > { %1184 = vmatprep.subr.bf16.mxu1 %v1446_v39  ;;  %1198 = vmatprep.mubr.msk.bf16.mxu1 %vm1447_vm0, %v1446_v39 }
  0x76   : > { %1178 = vmatprep.mubr.msk.bf16.mxu0 %vm1447_vm0, %v1446_v39 }
  0x77   : > { %1165 = vmatpush3.bf16.msra.mxu0 %v1302_v44 }
  0x78   : > { %1185 = vmatpush3.bf16.msra.mxu1 %v1299_v43  ;;  %1166 = vmatprep.subr.bf16.mxu0 %v1446_v39 }
  0x79   : > { %1186 = vmatprep.subr.bf16.mxu1 %v1446_v39 }
  0x7b   : > { %1167 = vmatpush3.bf16.msra.mxu0 %v1304_v46 }
  0x7c   : > { %1187 = vmatpush3.bf16.msra.mxu1 %v1301_v45  ;;  %1168 = vmatprep.subr.bf16.mxu0 %v1446_v39 }
  0x7d   : > { %1188 = vmatprep.subr.bf16.mxu1 %v1446_v39 }
  0x7f   : > { %1169 = vmatpush3.bf16.msra.mxu0 %v1306_v48 }
  0x80   : > { %1189 = vmatpush3.bf16.msra.mxu1 %v1303_v47  ;;  %1170 = vmatprep.subr.bf16.mxu0 %v1446_v39 }
  0x81   : > { %1190 = vmatprep.subr.bf16.mxu1 %v1446_v39 }
  0x83   : > { %1171 = vmatpush3.bf16.msra.mxu0 %v1308_v50 }
  0x84   : > { %1191 = vmatpush3.bf16.msra.mxu1 %v1305_v49  ;;  %1172 = vmatprep.subr.bf16.mxu0 %v1446_v39 }
  0x85   : > { %1192 = vmatprep.subr.bf16.mxu1 %v1446_v39 }
  0x87   : > { %1173 = vmatpush3.bf16.msra.mxu0 %v1310_v53 }
  0x88   : > { %1193 = vmatpush3.bf16.msra.mxu1 %v1307_v51  ;;  %1174 = vmatprep.subr.bf16.mxu0 %v1446_v39 }
  0x89   : > { %1194 = vmatprep.subr.bf16.mxu1 %v1446_v39 }
  0x8b   : > { %1175 = vmatpush3.bf16.msra.mxu0 %v1312_v55 }
  0x8c   : > { %1195 = vmatpush3.bf16.msra.mxu1 %v1309_v52  ;;  %1176 = vmatprep.subr.bf16.mxu0 %v1446_v39 }
  0x8d   : > { %1196 = vmatprep.subr.bf16.mxu1 %v1446_v39 }
  0x8f   : > { %1177 = vmatpush3.bf16.msra.mxu0 %v1313_v56 }
  0x90   : > { %1197 = vmatpush3.bf16.msra.mxu1 %v1311_v54 }
 0x145   : > { %v1116_v57 = vpop.f32.mrb[0].mxu0 }
 0x146   : > { %v1138_v58 = vpop.f32.mrb[0].mxu1  ;;  %v1117_v59 = vpop.f32.mrb[1].mxu0 }
 0x147   : > { %v1139_v60 = vpop.f32.mrb[1].mxu1  ;;  %v1118_v61 = vadd.f32 %v1117_v59, %v1116_v57  ;;  %v1119_v63 = vpop.f32.mrb[2].mxu0 }
 0x148   : > { %v1140_v62 = vadd.f32 %v1139_v60, %v1138_v58  ;;  %v1141_v0 = vpop.f32.mrb[2].mxu1  ;;  %v1120_v1 = vpop.f32.mrb[3].mxu0 }
 0x149   : > { %v1142_v2 = vpop.f32.mrb[3].mxu1 }
 0x14a   : > { %v681_v3 = vadd.f32 %v1140_v62, %v1118_v61 }
 0x14c   : > { %v688_v5 = vrot.slane %v681_v3, 1  ;;  %v693_v6 = vpack.c.bf16 %v681_v3, %v681_v3 }
 0x14e   : > { %v690_v8 = vmul.f32 %v688_v5, %v686_v4  ;;  %1199 = vmatmul.mubr.bf16.vlgmr.msra.gmra.mrb[4].mxu1 %v693_v6 }
 0x150   : > { %v692_v9 = vadd.f32 %v691_v7, %v690_v8 }
 0x152   : > { %v710_v10 = vpack.c.bf16 %v692_v9, %v692_v9 }
 0x154   : > { %1179 = vmatmul.mubr.bf16.vlgmr.msra.gmra.mrb[4].mxu0 %v710_v10 }
 0x221   : > { %v897_v11 = vpop.f32.mrb[4].mxu1 }
 0x222   : > { %v1200_v12 = vpop.f32.mrb[5].mxu1 }
 0x223   : > { %v900_v13 = vpop.f32.mrb[6].mxu1 }
 0x224   : > { %v1201_v14 = vpop.f32.mrb[7].mxu1 }
 0x227   : > { %v809_v15 = vpop.f32.mrb[4].mxu0 }
 0x228   : > { %v898_v17 = vadd.f32 %v897_v11, %v809_v15  ;;  %v1180_v18 = vpop.f32.mrb[5].mxu0 }
 0x229   : > { %v812_v19 = vpop.f32.mrb[6].mxu0 }
 0x22a   : > { %v910_v20 = vadd.f32 %v1094_v16, %v898_v17  ;;  %v1181_v21 = vpop.f32.mrb[7].mxu0 }
 0x22c   : > { %v911_v22 = vsub.f32 %v910_v20, %v688_v5 }
 0x22e   : > { %v912_v23 = vmul.f32 %v911_v22, %v911_v22 }
 0x230   : > { %913 = vst [vmem:[%s327_s17] sm:$0xf] %v912_v23 }
 0x231   : > { %1383 = shalt.err (!%p1380_p11)
}
 0x232   : > { %s1384_s10 = scalar_lea.hbm %s1656_s23, 64  ;;  %s1388_s16 = scalar_lea.hbm %s1705_s7, 128 }
 0x233   : > { %p1385_p13 = scmp.ne.s32.totalorder %s1656_s23, %s1384_s10  ;;  %p1389_p6 = scmp.lt.u32.totalorder %s1656_s23, %s1705_s7 }
 0x234   : > { %p1390_p9 = scmp.lt.u32.totalorder %s1388_s16, %s1384_s10  ;;  %p1392_p10 = scmp.lt.u32.totalorder %s1384_s10, %s1656_s23 }
 0x235   : > { %p1386_p5 = pnand %p1385_p13, %p1719_p1 }
 0x236   : > { %p1391_p12 = por %p1390_p9, %p1389_p6 }
 0x237   : > { %p1387_p0 = pneg %p1386_p5 }
 0x238   : > { %p1393_p2 = por %p1392_p10, %p1391_p12 }
 0x23a   : > { %p1394_p3 = pnand %p1393_p2, %p1387_p0 }
 0x23c   : > { %1397 = shalt.err (!%p1394_p3)
}
 0x23d   : > { %1210 = dma.vmem_to_hbm [thread:$0]  (%p1719_p1), %s1658_s20, 64, %s1656_s23, %s915_s29  }
 0x23e PF: > { %p1227_p4 = scmp.ge.s32.totalorder %s1440_s27, 2  ;;  %s940_s17 = sand.u32 1, %s1428_s24  }
 0x23f   : > { %p1720_p7 = scmp.ne.s32.totalorder %s1711_s12, 0  ;;  %s941_s21 = scalar_lea.sflag [#allocation4], %s940_s17 }
 0x241   : > { %p1220_p8 = pnand %p1227_p4, %p1720_p7 }
 0x243   : > { %1423 = dma.done.wait (!%p1220_p8), %s941_s21, 64  }
 0x244   : > { %1425 = vsyncadd (!%p1220_p8), %s941_s21, 4294967232  ;;  %s1721_s22 = sld [smem:[#allocation11_spill]]  ;;  %p19_p11 = scmp.ge.s32.totalorder %s1514_s30, 4  }
 0x245   : > { %s1722_s24 = smov %s1432_s25  ;;  %s1723_s25 = smov %s1436_s26 }
 0x246   : > { %s1725_s27 = smov %s1514_s30  ;;  %21 = sbr.rel (!%p19_p11) target bundleno = 5 (0x5), region = 98 }
 0x24a   : > { %s1724_s26 = smov %s1721_s22 }
 0x24d   :  { %946 = vsyncpa [#allocation3], 1 }
 0x24e   :  { %948 = vsyncpa [#allocation3 + $0x1], 1 }
 0x24f   :  { %949 = vsyncpa [#allocation6], 1 }
 0x250   :  { %950 = vsyncpa [#allocation4], 1 }
 0x251   :  { %952 = vsyncpa [#allocation4 + $0x1], 1 }

</bundles_post_ra>
